<compile_context>
chip_gen: v5e
topology: v5e:2x2
jax: 0.10.0
libtpu: 0.0.40
codegen_flags: <defaults>
</compile_context>

<pallas_src>
import jax
import jax.numpy as jnp
from jax.experimental import pallas as pl
from jax.experimental.pallas import tpu as pltpu


def _round_up(v, m):
    return ((v + m - 1) // m) * m


def _proj_kernel(x_ref, p_ref, o_ref):
    # Full-K contraction in one MXU call, f32 accumulation, cast on store.
    o_ref[...] = jnp.dot(
        x_ref[...], p_ref[...], preferred_element_type=jnp.float32
    ).astype(o_ref.dtype)


def _proj_kernel_ksplit(x_ref, p_ref, o_ref, acc_ref):
    # K-reduction across the last grid axis with an f32 accumulator.
    @pl.when(pl.program_id(2) == 0)
    def _():
        acc_ref[...] = jnp.zeros_like(acc_ref)

    acc_ref[...] += jnp.dot(
        x_ref[...], p_ref[...], preferred_element_type=jnp.float32
    )

    @pl.when(pl.program_id(2) == pl.num_programs(2) - 1)
    def _():
        o_ref[...] = acc_ref[...].astype(o_ref.dtype)


def _vmem_estimate(tm, tk, tn, in_itemsize, out_itemsize, with_acc):
    # Double-buffered inputs + outputs (BlockSpec pipelining) + acc scratch.
    b = 2 * (tm * tk + tk * tn) * in_itemsize
    b += 2 * tm * tn * out_itemsize
    if with_acc:
        b += tm * tn * 4
    return b


def proj_learner_forward(
    x,
    proj,
    *,
    tm=512,
    tn=512,
    tk=None,
    compute_dtype=jnp.bfloat16,
    vmem_budget_bytes=12 * 1024 * 1024,
):
    """Pallas equivalent of ProjLearner.forward: x @ proj (or x if proj is None).

    Leading dims of x are flattened into a row axis N; K = x.shape[-1].
    `compute_dtype=None` keeps the original input dtype (no cast).
    `tk=None` keeps the full reduction axis in one block when it fits VMEM.
    """
    if proj is None:
        return x

    out_dtype = x.dtype
    lead_shape = x.shape[:-1]
    K = x.shape[-1]
    K2, M = proj.shape
    assert K == K2, "inner dims must match"

    x2 = x.reshape(-1, K)
    N = x2.shape[0]

    if compute_dtype is not None:
        x2 = x2.astype(compute_dtype)
        p2 = proj.astype(compute_dtype)
    else:
        p2 = proj

    in_itemsize = jnp.dtype(x2.dtype).itemsize
    out_itemsize = jnp.dtype(out_dtype).itemsize

    # Sublane packing: 8 rows/vreg for 32-bit dtypes, 16 for 16-bit.
    pack = 8 * max(1, 4 // in_itemsize)

    # Effective tiles: respect (pack, 128) granularity, never exceed problem size.
    tm_eff = min(_round_up(tm, pack), _round_up(N, pack))
    tn_eff = min(_round_up(tn, 128), _round_up(M, 128))
    Kp0 = _round_up(K, 128)

    # Pick the K block: prefer whole-K (single MXU call, no accumulator).
    if tk is not None:
        tk_eff = min(_round_up(tk, 128), Kp0)
    else:
        tk_eff = Kp0
        while (
            tk_eff > 128
            and _vmem_estimate(tm_eff, tk_eff, tn_eff, in_itemsize, out_itemsize, True)
            > vmem_budget_bytes
        ):
            tk_eff -= 128
    split_k = tk_eff < Kp0

    Np = _round_up(N, tm_eff)
    Mp = _round_up(M, tn_eff)
    Kp = _round_up(K, tk_eff)

    if (Np, Kp) != (N, K):
        x2 = jnp.pad(x2, ((0, Np - N), (0, Kp - K)))
    if (Kp, Mp) != (K, M):
        p2 = jnp.pad(p2, ((0, Kp - K), (0, Mp - M)))

    ce = pl.CostEstimate(
        flops=2 * Np * Kp * Mp,
        transcendentals=0,
        bytes_accessed=Np * Kp * in_itemsize
        + Kp * Mp * in_itemsize
        + Np * Mp * out_itemsize,
    )

    if not split_k:
        grid = (Np // tm_eff, Mp // tn_eff)
        out = pl.pallas_call(
            _proj_kernel,
            out_shape=jax.ShapeDtypeStruct((Np, Mp), out_dtype),
            grid_spec=pltpu.PrefetchScalarGridSpec(
                num_scalar_prefetch=0,
                grid=grid,
                in_specs=[
                    # x: stream (tm, K) row tiles.
                    pl.BlockSpec((tm_eff, Kp), lambda i, j: (i, 0)),
                    # proj: (K, tn) slab, invariant over the row axis -> VMEM resident.
                    pl.BlockSpec((Kp, tn_eff), lambda i, j: (0, j)),
                ],
                out_specs=pl.BlockSpec((tm_eff, tn_eff), lambda i, j: (i, j)),
            ),
            compiler_params=pltpu.CompilerParams(
                dimension_semantics=("parallel", "parallel"),
            ),
            cost_estimate=ce,
        )(x2, p2)
    else:
        grid = (Np // tm_eff, Mp // tn_eff, Kp // tk_eff)
        out = pl.pallas_call(
            _proj_kernel_ksplit,
            out_shape=jax.ShapeDtypeStruct((Np, Mp), out_dtype),
            grid_spec=pltpu.PrefetchScalarGridSpec(
                num_scalar_prefetch=0,
                grid=grid,
                in_specs=[
                    pl.BlockSpec((tm_eff, tk_eff), lambda i, j, k: (i, k)),
                    pl.BlockSpec((tk_eff, tn_eff), lambda i, j, k: (k, j)),
                ],
                out_specs=pl.BlockSpec((tm_eff, tn_eff), lambda i, j, k: (i, j)),
                scratch_shapes=[pltpu.VMEM((tm_eff, tn_eff), jnp.float32)],
            ),
            compiler_params=pltpu.CompilerParams(
                dimension_semantics=("parallel", "parallel", "arbitrary"),
            ),
            cost_estimate=ce,
        )(x2, p2)

    out = out[:N, :M]
    return out.reshape(*lead_shape, M)


if __name__ == "__main__":
    key = jax.random.PRNGKey(0)
    kx, kp, kxb = jax.random.split(key, 3)

    # Small CLIP-like shapes: N tokens of visual width K projected to dim M.
    N, K, M = 16, 256, 128
    x = jax.random.normal(kx, (N, K), dtype=jnp.float32)
    proj = jax.random.normal(kp, (K, M), dtype=jnp.float32) * (K ** -0.5)

    # 1) Default (bf16 compute, f32 accumulate) whole-K path.
    out = jax.block_until_ready(proj_learner_forward(x, proj))
    assert out.shape == (N, M)
    ref_f32 = x @ proj
    ref_bf16 = jnp.dot(
        x.astype(jnp.bfloat16), proj.astype(jnp.bfloat16),
        preferred_element_type=jnp.float32,
    ).astype(x.dtype)
    assert jnp.allclose(out, ref_bf16, atol=5e-3, rtol=5e-3)
    assert jnp.allclose(out, ref_f32, atol=5e-2, rtol=5e-2)

    # 2) Ragged shapes + batched leading dims, full-precision compute path.
    B, T, M2 = 3, 7, 72
    xb = jax.random.normal(kxb, (B, T, K), dtype=jnp.float32)
    proj2 = jax.random.normal(jax.random.PRNGKey(1), (K, M2), dtype=jnp.float32) * (K ** -0.5)
    out2 = jax.block_until_ready(
        proj_learner_forward(xb, proj2, compute_dtype=None)
    )
    assert out2.shape == (B, T, M2)
    assert jnp.allclose(out2, xb @ proj2, atol=1e-2, rtol=1e-2)

    # 3) Forced K-split (accumulator) path, full precision.
    out3 = jax.block_until_ready(
        proj_learner_forward(x, proj, tk=128, compute_dtype=None)
    )
    assert out3.shape == (N, M)
    assert jnp.allclose(out3, ref_f32, atol=1e-2, rtol=1e-2)

    # 4) proj=None branch: identity passthrough.
    out_none = proj_learner_forward(x, None)
    assert out_none is x

    print("KERNEL_OK")
</pallas_src>

<mosaic_0001>
module attributes {stable_mosaic.version = 11 : i64} {
  func.func @_proj_kernel(%arg0: i32, %arg1: i32, %arg2: memref<16x256xbf16, #tpu.memory_space<vmem>>, %arg3: memref<256x128xbf16, #tpu.memory_space<vmem>>, %arg4: memref<16x128xf32, #tpu.memory_space<vmem>>) attributes {dimension_semantics = [#tpu.dimension_semantics<parallel>, #tpu.dimension_semantics<parallel>], iteration_bounds = array<i64: 1, 1>, scalar_prefetch = 0 : i64, scratch_operands = 0 : i64, tpu.core_type = #tpu.core_type<tc>, window_params = [{transform_indices = @transform_0, window_bounds = array<i64: 16, 256>}, {transform_indices = @transform_1, window_bounds = array<i64: 256, 128>}, {transform_indices = @transform_2, window_bounds = array<i64: 16, 128>}]} {
    %c0 = arith.constant 0 : index
    %c0_0 = arith.constant 0 : index
    %0 = vector.load %arg2[%c0, %c0_0] : memref<16x256xbf16, #tpu.memory_space<vmem>>, vector<16x256xbf16>
    %c0_1 = arith.constant 0 : index
    %c0_2 = arith.constant 0 : index
    %1 = vector.load %arg3[%c0_1, %c0_2] : memref<256x128xbf16, #tpu.memory_space<vmem>>, vector<256x128xbf16>
    %cst = arith.constant dense<0.000000e+00> : vector<16x128xf32>
    %2 = tpu.matmul %0, %1, %cst {dimension_numbers = #tpu.dot_dimension_numbers<[1], [0], [0], [1], [0, 0, 1, 1], [], []>} : vector<16x256xbf16>, vector<256x128xbf16>, vector<16x128xf32> -> vector<16x128xf32>
    %c0_3 = arith.constant 0 : index
    %c0_4 = arith.constant 0 : index
    %3 = vector.load %arg4[%c0_3, %c0_4] : memref<16x128xf32, #tpu.memory_space<vmem>>, vector<16x128xf32>
    tpu.vector_store %arg4[%c0_3, %c0_4], %2 {strides = array<i32>} : memref<16x128xf32, #tpu.memory_space<vmem>>, vector<16x128xf32>,
    return
  }
  func.func @transform_0(%arg0: i32, %arg1: i32) -> (i32, i32) {
    %c0_i32 = arith.constant 0 : i32
    %c0_i32_0 = arith.constant 0 : i32
    return %arg0, %c0_i32 : i32, i32
  }
  func.func @transform_1(%arg0: i32, %arg1: i32) -> (i32, i32) {
    %c0_i32 = arith.constant 0 : i32
    %c0_i32_0 = arith.constant 0 : i32
    return %c0_i32, %arg1 : i32, i32
  }
  func.func @transform_2(%arg0: i32, %arg1: i32) -> (i32, i32) {
    %c0_i32 = arith.constant 0 : i32
    return %arg0, %arg1 : i32, i32
  }
}

</mosaic_0001>

<bundles_post_ra>
// kernel: tpu_custom_call.1
= control target key start
LH: loop header
LB: loop body
LE: loop exit
PB: predicated region body
PF: predicated region fallthrough
CT: control target
= control target key end

     0   :  { %7 = vsyncpa [#allocation3], 0  ;;  %s446_s0 = inlined_call_operand.hbm [shape: bf16[16,256], index: 0, kind: input, shape index: {}]   ;;  %s447_s1 = inlined_call_operand.hbm [shape: bf16[256,128], index: 1, kind: input, shape index: {}]   ;;  %s448_s2 = inlined_call_operand.hbm [shape: f32[16,128], index: 2, kind: output, shape index: {}]  }
   0x1   :  { %8 = vsyncpa [#allocation6], 0 }
   0x2   :  { %9 = vsyncpa [#allocation4], 0  ;;  %s14_s11 = sshll.u32 %s446_s0, 4  ;;  %s409_s12 = smov [#allocation2]   ;;  %s15_s11 = int_to_ptr.hbm [resolvable:$true] %s14_s11 }
   0x3   :  { %s16_s13 = sshll.u32 %s409_s12, 4  ;;  %s27_s16 = sshll.u32 %s447_s1, 4  ;;  %s17_s13 = int_to_ptr.vmem [resolvable:$true] %s16_s13  ;;  %s28_s16 = int_to_ptr.hbm [resolvable:$true] %s27_s16 }
   0x4   :  { %s410_s17 = smov 128   ;;  %s411_s18 = smov 8  }
   0x5   :  { %22 = dma.hbm_to_vmem [thread:$0]  %s15_s11, 256, %s17_s13, [#allocation3], %s410_s17, %s410_s17, %s411_s18  }
   0x6   :  { %s412_s19 = smov [#allocation5]   ;;  %s413_s21 = smov 64  }
   0x7   :  { %s29_s20 = sshll.u32 %s412_s19, 4  ;;  %s414_s0 = smov 4   ;;  %s30_s20 = int_to_ptr.vmem [resolvable:$true] %s29_s20 }
   0x8   :  { %35 = dma.hbm_to_vmem [thread:$0]  %s28_s16, 2048, %s30_s20, [#allocation6], %s413_s21, %s413_s21, %s414_s0  }
   0x9   :  { %403 = dma.done.wait [#allocation3], 256  }
   0xa   :  { %404 = vsyncadd [#allocation3], 4294967040 }
   0xb   :  { %405 = dma.done.wait [#allocation6], 2048  }
   0xc   :  { %406 = vsyncadd [#allocation6], 4294965248  ;;  %v315_v0 = vld [vmem:[#allocation5 + $0x38] sm:$0xff]  ;;  %v314_v2 = vld [vmem:[#allocation5 + $0x30] sm:$0xff]  ;;  %s415_s1 = smov [#allocation7]   ;;  %s220_s25 = sshll.u32 %s448_s2, 4  ;;  %s221_s25 = int_to_ptr.hbm [resolvable:$true] %s220_s25 }
   0xd   :  { %v323_v1 = vld [vmem:[#allocation5 + $0x78] sm:$0xff]  ;;  %184 = vmatpush.bf16.msra.mxu0 %v315_v0  ;;  %v322_v3 = vld [vmem:[#allocation5 + $0x70] sm:$0xff]  ;;  %v313_v4 = vld [vmem:[#allocation5 + $0x28] sm:$0xff]  ;;  %s218_s22 = sshll.u32 %s415_s1, 4  ;;  %s219_s22 = int_to_ptr.vmem [resolvable:$true] %s218_s22 }
   0xe   :  { %198 = vmatpush.bf16.msra.mxu1 %v323_v1  ;;  %v321_v5 = vld [vmem:[#allocation5 + $0x68] sm:$0xff]  ;;  %v312_v6 = vld [vmem:[#allocation5 + $0x20] sm:$0xff]  ;;  %v311_v8 = vld [vmem:[#allocation5 + $0x18] sm:$0xff] }
   0xf   :  { %v320_v7 = vld [vmem:[#allocation5 + $0x60] sm:$0xff]  ;;  %v319_v9 = vld [vmem:[#allocation5 + $0x58] sm:$0xff]  ;;  %v310_v10 = vld [vmem:[#allocation5 + $0x10] sm:$0xff] }
  0x10   :  { %v318_v11 = vld [vmem:[#allocation5 + $0x50] sm:$0xff]  ;;  %v309_v12 = vld [vmem:[#allocation5 + $0x8] sm:$0xff]  ;;  %v308_v14 = vld [vmem:[#allocation5] sm:$0xff] }
  0x11   :  { %185 = vmatpush.bf16.msra.mxu0 %v314_v2  ;;  %v317_v13 = vld [vmem:[#allocation5 + $0x48] sm:$0xff]  ;;  %v316_v15 = vld [vmem:[#allocation5 + $0x40] sm:$0xff]  ;;  %v236_v16 = vld [vmem:[#allocation2] sm:$0xf] }
  0x12   :  { %199 = vmatpush.bf16.msra.mxu1 %v322_v3  ;;  %v307_v17 = vld [vmem:[#allocation2 + $0x4] sm:$0xf0]  ;;  %v306_v18 = vld [vmem:[#allocation2 + $0x4] sm:$0xf]  ;;  %v238_v19 = vld [vmem:[#allocation2 + $0x8] sm:$0xf0] }
  0x13   :  { %v237_v20 = vor.u32 %v307_v17, %v236_v16  ;;  %v241_v21 = vor.u32 %v306_v18, %v238_v19 }
  0x15   :  { %186 = vmatpush.bf16.msra.mxu0 %v313_v4 }
  0x16   :  { %200 = vmatpush.bf16.msra.mxu1 %v321_v5 }
  0x19   :  { %187 = vmatpush.bf16.msra.mxu0 %v312_v6 }
  0x1a   :  { %201 = vmatpush.bf16.msra.mxu1 %v320_v7 }
  0x1d   :  { %188 = vmatpush.bf16.msra.mxu0 %v311_v8 }
  0x1e   :  { %202 = vmatpush.bf16.msra.mxu1 %v319_v9 }
  0x21   :  { %189 = vmatpush.bf16.msra.mxu0 %v310_v10 }
  0x22   :  { %203 = vmatpush.bf16.msra.mxu1 %v318_v11 }
  0x25   :  { %190 = vmatpush.bf16.msra.mxu0 %v309_v12 }
  0x26   :  { %204 = vmatpush.bf16.msra.mxu1 %v317_v13 }
  0x29   :  { %191 = vmatpush.bf16.msra.mxu0 %v308_v14 }
  0x2a   :  { %205 = vmatpush.bf16.msra.mxu1 %v316_v15 }
  0x2c   :  { %192 = vmatmul.bf16.vlgmr.msra.gmra.mxu0 %v237_v20 }
  0x2d   :  { %206 = vmatmul.bf16.vlgmr.msra.gmra.mxu1 %v241_v21 }
  0xa9   :  { %v193_v22 = vpop.f32.mrf.mxu0 }
  0xaa   :  { %v207_v23 = vpop.f32.mrf.mxu1 }
  0xab   :  { %v208_v24 = vadd.f32 %v207_v23, %v193_v22 }
  0xad   :  { %212 = vst [vmem:[#allocation7] sm:$0xff] %v208_v24 }
  0xb1   :  { %v195_v25 = vpop.f32.mrf.mxu0 }
  0xb2   :  { %v209_v26 = vpop.f32.mrf.mxu1 }
  0xb3   :  { %v210_v27 = vadd.f32 %v209_v26, %v195_v25 }
  0xb5   :  { %213 = vst [vmem:[#allocation7 + $0x8] sm:$0xff] %v210_v27 }
  0xb6   :  { %226 = dma.vmem_to_hbm [thread:$0]  %s219_s22, 256, %s221_s25, [#allocation4], %s410_s17, %s410_s17, %s411_s18  }
  0xb7   :  { %407 = dma.done.wait [#allocation4], 256  }
  0xb8   :  { %408 = vsyncadd [#allocation4], 4294967040 }
  0xb9   :  { %231 = vsyncpa [#allocation3], 1 }
  0xba   :  { %232 = vsyncpa [#allocation6], 1 }
  0xbb   :  { %233 = vsyncpa [#allocation4], 1 }

</bundles_post_ra>
